<compile_context>
chip_gen: v7x
topology: tpu7x:2x2x1
jax: 0.10.0
libtpu: 0.0.40
codegen_flags: <defaults>
</compile_context>

<pallas_src>
import functools

import jax
import jax.numpy as jnp
from jax.experimental import pallas as pl
from jax.experimental.pallas import tpu as pltpu


def _round_down(x, m):
    return (x // m) * m


def _softad_ce_kernel(logits_ref, target_ref, out_ref, *,
                      theta, sigma, eta, n_valid, block_rows):
    del eta  # final eta*theta term is applied outside the kernel
    i = pl.program_id(0)

    x = logits_ref[...]                                     # (TN, C), native dtype
    tgt = target_ref[...]                                   # (TN, 1) int32

    # --- per-sample cross-entropy (reduction='none'): lse - x[target] ---
    m = jnp.max(x, axis=-1, keepdims=True)                  # native dtype
    e = jnp.exp((x - m).astype(jnp.float32))                # f32 exp tile (<= 1, no ovf)
    lse = m.astype(jnp.float32) + jnp.log(
        jnp.sum(e, axis=-1, keepdims=True))                 # (TN, 1) f32

    # gather logits[i, target[i]] without a one-hot f32 tile (exactly one hit
    # per row, so the sum is exact regardless of dtype)
    col = jax.lax.broadcasted_iota(jnp.int32, x.shape, 1)
    tgt_logit = jnp.sum(jnp.where(col == tgt, x, jnp.zeros_like(x)),
                        axis=-1, keepdims=True).astype(jnp.float32)

    loss = lse - tgt_logit                                   # (TN, 1) f32

    # --- SoftAD transform: rho(u) = sqrt(u^2 + 1) - 1 ---
    u = (loss - theta) * (1.0 / sigma)
    rho = jnp.sqrt(u * u + 1.0) - 1.0                        # (TN, 1) f32

    # Mask tail rows of a partial last block with a *select* (not a multiply),
    # so inf/nan produced by garbage rows is discarded safely.
    row = jax.lax.broadcasted_iota(jnp.int32, rho.shape, 0) + i * block_rows
    rho = jnp.where(row < n_valid, rho, 0.0)

    # Per-block partial sum, written to this block's own lane-dense output
    # tile -> no loop-carried state, batch axis can be "parallel".
    out_ref[...] = jnp.broadcast_to(jnp.sum(rho), out_ref.shape).astype(jnp.float32)


def loss_softad_ce(logits, target, *, theta, sigma, eta, block_rows=None):
    """SoftAD loss with CrossEntropy base loss.

    logits: (N, C) float, target: (N,) int class indices. Returns scalar f32.
    """
    sigma = float(sigma) + 1e-12  # matches the PyTorch module
    theta = float(theta)
    eta = float(eta)

    n, c = logits.shape
    target2d = target.reshape(n, 1).astype(jnp.int32)

    itemsize = int(jnp.dtype(logits.dtype).itemsize)
    # dtype-specific sublane multiple: 8 (f32), 16 (bf16), 32 (int8/fp8)
    sublane = max(8, 32 // max(itemsize, 1))

    # Generation-aware VMEM budget (128 MiB v5e/v6e, 64 MiB/TC v7x).
    try:
        info = pltpu.get_tpu_info()
        vmem_cap = int(getattr(info, "vmem_capacity_bytes", 64 << 20))
    except Exception:  # pragma: no cover - conservative fallback
        vmem_cap = 64 << 20
    vmem_limit = int(min(vmem_cap // 2, 64 << 20))

    if block_rows is None:
        # Per-row footprint: 2x double-buffered input tile + ~4x f32
        # intermediates (exp tile, iota, compare/select temporaries).
        per_row = 2 * c * itemsize + 4 * c * 4
        budget = int(0.6 * vmem_limit)
        block_rows = max(sublane, _round_down(budget // max(per_row, 1), sublane))

    block_rows = int(block_rows)
    if block_rows >= n:
        block_rows = n                     # single block == full array (allowed)
    else:
        block_rows = max(sublane, _round_down(block_rows, sublane))
        if block_rows >= n:
            block_rows = n

    num_blocks = pl.cdiv(n, block_rows)

    kernel = functools.partial(
        _softad_ce_kernel,
        theta=theta, sigma=sigma, eta=eta,
        n_valid=int(n), block_rows=int(block_rows),
    )

    cost = pl.CostEstimate(
        flops=int(6 * n * c),
        transcendentals=int(n * c + 2 * n),
        bytes_accessed=int(n * c * itemsize + n * 4 + num_blocks * 8 * 128 * 4),
    )

    partials = pl.pallas_call(
        kernel,
        out_shape=jax.ShapeDtypeStruct((num_blocks, 8, 128), jnp.float32),
        grid=(num_blocks,),
        in_specs=[
            pl.BlockSpec((block_rows, c), lambda i: (i, 0)),   # logits tile
            pl.BlockSpec((block_rows, 1), lambda i: (i, 0)),   # target tile
        ],
        out_specs=pl.BlockSpec((1, 8, 128), lambda i: (i, 0, 0)),
        compiler_params=pltpu.CompilerParams(
            dimension_semantics=("parallel",),
            vmem_limit_bytes=vmem_limit,
        ),
        cost_estimate=cost,
    )(logits, target2d)

    # Tiny host-side epilogue: sum per-block partials, scale, add eta*theta.
    total = jnp.sum(partials[:, 0, 0])
    return eta * theta + (sigma * sigma) * total / n


def _reference(logits, target, *, theta, sigma, eta):
    sigma = sigma + 1e-12
    lse = jax.scipy.special.logsumexp(logits.astype(jnp.float32), axis=-1)
    tgt_logit = jnp.take_along_axis(
        logits.astype(jnp.float32), target[:, None].astype(jnp.int32), axis=-1
    )[:, 0]
    loss = lse - tgt_logit
    u = (loss - theta) / sigma
    rho = jnp.sqrt(u * u + 1.0) - 1.0
    return eta * theta + sigma ** 2 * jnp.mean(rho)


if __name__ == "__main__":
    theta, sigma, eta = 0.5, 1.0, 0.1
    key = jax.random.PRNGKey(0)

    # Case 1: small, single tile (N multiple of 8)
    k1, k2, key = jax.random.split(key, 3)
    N, C = 8, 32
    logits = jax.random.normal(k1, (N, C), dtype=jnp.float32)
    target = jax.random.randint(k2, (N,), 0, C, dtype=jnp.int32)
    out = jax.block_until_ready(
        loss_softad_ce(logits, target, theta=theta, sigma=sigma, eta=eta))
    ref = _reference(logits, target, theta=theta, sigma=sigma, eta=eta)
    assert jnp.allclose(out, ref, rtol=1e-5, atol=1e-5), (out, ref)

    # Case 2a: N not a multiple of 8, single full-array block (no padding).
    k1, k2, key = jax.random.split(key, 3)
    N2 = 13
    logits2 = jax.random.normal(k1, (N2, C), dtype=jnp.float32)
    target2 = jax.random.randint(k2, (N2,), 0, C, dtype=jnp.int32)
    out2 = jax.block_until_ready(
        loss_softad_ce(logits2, target2, theta=theta, sigma=sigma, eta=eta))
    ref2 = _reference(logits2, target2, theta=theta, sigma=sigma, eta=eta)
    assert jnp.allclose(out2, ref2, rtol=1e-5, atol=1e-5), (out2, ref2)

    # Case 2b: same N=13 with block_rows=8 -> partial last block, exercises
    # the in-kernel tail-row masking (no wrapper padding anymore).
    out2b = jax.block_until_ready(
        loss_softad_ce(logits2, target2, theta=theta, sigma=sigma, eta=eta,
                       block_rows=8))
    assert jnp.allclose(out2b, ref2, rtol=1e-5, atol=1e-5), (out2b, ref2)

    # Case 3: multi-block grid (exercises per-block partials + host reduce)
    k1, k2, key = jax.random.split(key, 3)
    N3 = 24
    logits3 = jax.random.normal(k1, (N3, C), dtype=jnp.float32)
    target3 = jax.random.randint(k2, (N3,), 0, C, dtype=jnp.int32)
    out3 = jax.block_until_ready(
        loss_softad_ce(logits3, target3, theta=theta, sigma=sigma, eta=eta,
                       block_rows=8))
    ref3 = _reference(logits3, target3, theta=theta, sigma=sigma, eta=eta)
    assert jnp.allclose(out3, ref3, rtol=1e-5, atol=1e-5), (out3, ref3)

    print("KERNEL_OK")
</pallas_src>

<mosaic_0001>
module attributes {stable_mosaic.version = 11 : i64} {
  func.func @_softad_ce_kernel(%arg0: i32, %arg1: memref<8x32xf32, #tpu.memory_space<vmem>>, %arg2: memref<8x1xi32, #tpu.memory_space<vmem>>, %arg3: memref<1x8x128xf32, #tpu.memory_space<vmem>>) attributes {dimension_semantics = [#tpu.dimension_semantics<parallel>], iteration_bounds = array<i64: 1>, scalar_prefetch = 0 : i64, scratch_operands = 0 : i64, tpu.core_type = #tpu.core_type<tc>, window_params = [{transform_indices = @transform_0, window_bounds = array<i64: 8, 32>}, {transform_indices = @transform_1, window_bounds = array<i64: 8, 1>}, {transform_indices = @transform_2, window_bounds = array<i64: 1, 8, 128>}]} {
    %c0 = arith.constant 0 : index
    %c0_0 = arith.constant 0 : index
    %0 = vector.load %arg1[%c0, %c0_0] : memref<8x32xf32, #tpu.memory_space<vmem>>, vector<8x32xf32>
    %c0_1 = arith.constant 0 : index
    %c0_2 = arith.constant 0 : index
    %1 = vector.load %arg2[%c0_1, %c0_2] : memref<8x1xi32, #tpu.memory_space<vmem>>, vector<8x1xi32>
    %cst = arith.constant dense<0xFF800000> : vector<8xf32>
    %2 = vector.multi_reduction <maximumf>, %0, %cst [1] : vector<8x32xf32> to vector<8xf32>
    %3 = vector.shape_cast %2 : vector<8xf32> to vector<8x1xf32>
    %4 = vector.broadcast %3 : vector<8x1xf32> to vector<8x32xf32>
    %5 = arith.subf %0, %4 : vector<8x32xf32>
    %6 = math.exp %5 : vector<8x32xf32>
    %cst_3 = arith.constant dense<0.000000e+00> : vector<8xf32>
    %7 = vector.multi_reduction <add>, %6, %cst_3 [1] : vector<8x32xf32> to vector<8xf32>
    %8 = vector.shape_cast %7 : vector<8xf32> to vector<8x1xf32>
    %9 = math.log %8 : vector<8x1xf32>
    %10 = arith.addf %3, %9 : vector<8x1xf32>
    %11 = tpu.iota {dimensions = array<i32: 1>} : vector<8x32xi32>
    %12 = vector.broadcast %1 : vector<8x1xi32> to vector<8x32xi32>
    %13 = arith.cmpi eq, %11, %12 : vector<8x32xi32>
    %cst_4 = arith.constant 0.000000e+00 : f32
    %14 = vector.broadcast %cst_4 : f32 to vector<8x32xf32>
    %15 = arith.select %13, %0, %14 : vector<8x32xi1>, vector<8x32xf32>
    %cst_5 = arith.constant dense<0.000000e+00> : vector<8xf32>
    %16 = vector.multi_reduction <add>, %15, %cst_5 [1] : vector<8x32xf32> to vector<8xf32>
    %17 = vector.shape_cast %16 : vector<8xf32> to vector<8x1xf32>
    %18 = arith.subf %10, %17 : vector<8x1xf32>
    %cst_6 = arith.constant 5.000000e-01 : f32
    %19 = vector.broadcast %cst_6 : f32 to vector<8x1xf32>
    %20 = arith.subf %18, %19 : vector<8x1xf32>
    %cst_7 = arith.constant 1.000000e+00 : f32
    %21 = vector.broadcast %cst_7 : f32 to vector<8x1xf32>
    %22 = arith.mulf %20, %21 : vector<8x1xf32>
    %23 = arith.mulf %22, %22 : vector<8x1xf32>
    %cst_8 = arith.constant 1.000000e+00 : f32
    %24 = vector.broadcast %cst_8 : f32 to vector<8x1xf32>
    %25 = arith.addf %23, %24 : vector<8x1xf32>
    %26 = math.sqrt %25 : vector<8x1xf32>
    %cst_9 = arith.constant 1.000000e+00 : f32
    %27 = vector.broadcast %cst_9 : f32 to vector<8x1xf32>
    %28 = arith.subf %26, %27 : vector<8x1xf32>
    %29 = tpu.iota {dimensions = array<i32: 0>} : vector<8x1xi32>
    %c8_i32 = arith.constant 8 : i32
    %30 = arith.muli %arg0, %c8_i32 : i32
    %31 = vector.broadcast %30 : i32 to vector<8x1xi32>
    %32 = arith.addi %29, %31 : vector<8x1xi32>
    %c8_i32_10 = arith.constant 8 : i32
    %33 = vector.broadcast %c8_i32_10 : i32 to vector<8x1xi32>
    %34 = arith.cmpi slt, %32, %33 : vector<8x1xi32>
    %cst_11 = arith.constant 0.000000e+00 : f32
    %35 = vector.broadcast %cst_11 : f32 to vector<8x1xf32>
    %36 = arith.select %34, %28, %35 : vector<8x1xi1>, vector<8x1xf32>
    %37 = vector.shape_cast %36 : vector<8x1xf32> to vector<1x8x1xf32>
    %cst_12 = arith.constant dense<0.000000e+00> : vector<1xf32>
    %38 = vector.multi_reduction <add>, %37, %cst_12 [1, 2] : vector<1x8x1xf32> to vector<1xf32>
    %39 = vector.shape_cast %38 : vector<1xf32> to vector<1x1x1xf32>
    %40 = vector.extract %39[0, 0, 0] : f32 from vector<1x1x1xf32>
    %41 = vector.broadcast %40 : f32 to vector<1x8x128xf32>
    %c0_13 = arith.constant 0 : index
    %c0_14 = arith.constant 0 : index
    %c0_15 = arith.constant 0 : index
    %42 = vector.load %arg3[%c0_13, %c0_14, %c0_15] : memref<1x8x128xf32, #tpu.memory_space<vmem>>, vector<1x8x128xf32>
    tpu.vector_store %arg3[%c0_13, %c0_14, %c0_15], %41 {strides = array<i32>} : memref<1x8x128xf32, #tpu.memory_space<vmem>>, vector<1x8x128xf32>,
    return
  }
  func.func @transform_0(%arg0: i32) -> (i32, i32) {
    %c0_i32 = arith.constant 0 : i32
    %c0_i32_0 = arith.constant 0 : i32
    return %arg0, %c0_i32 : i32, i32
  }
  func.func @transform_1(%arg0: i32) -> (i32, i32) {
    %c0_i32 = arith.constant 0 : i32
    %c0_i32_0 = arith.constant 0 : i32
    return %arg0, %c0_i32 : i32, i32
  }
  func.func @transform_2(%arg0: i32) -> (i32, i32, i32) {
    %c0_i32 = arith.constant 0 : i32
    %c0_i32_0 = arith.constant 0 : i32
    %c0_i32_1 = arith.constant 0 : i32
    return %arg0, %c0_i32, %c0_i32_0 : i32, i32, i32
  }
}

</mosaic_0001>

<bundles_post_ra>
// kernel: tpu_custom_call.1
= control target key start
LH: loop header
LB: loop body
LE: loop exit
PB: predicated region body
PF: predicated region fallthrough
CT: control target
= control target key end

     0   :  { %vm14_vm0 = vcmask 261120   ;;  %s158_s0 = inlined_call_operand.vmem [shape: f32[8,32], index: 0, kind: input, shape index: {}]   ;;  %s159_s1 = inlined_call_operand.vmem [shape: s32[8,1], index: 1, kind: input, shape index: {}]   ;;  %s160_s2 = inlined_call_operand.hbm [shape: f32[1,8,128], index: 2, kind: output, shape index: {}]  }
   0x1   :  { %v12_v0 = vld [vmem:[%s158_s0] sm:$0xff] }
   0x2   :  { %7 = vsyncpa [#allocation3], 0  ;;  %v15_v1 = vsel %vm14_vm0, %v12_v0, -inf  ;;  %v120_v2 = vmov 0   ;;  %v13_v3 = vld [vmem:[%s159_s1] sm:$0xff]  ;;  %v27_v7 = vlaneseq  ;;  %vm56_vm4 = vcmask 7168  }
   0x3   :  { %89 = vset.pattern.permute.xlu0 %v120_v2  ;;  %s121_s0 = smov [#allocation2]  }
   0x4   :  { %16 = vmax.xlane.f32.xlu0 %v15_v1  ;;  %v28_v8 = vand.u32 127, %v27_v7  ;;  %s75_s1 = sshll.u32 %s121_s0, 4  ;;  %s76_s1 = int_to_ptr.vmem [resolvable:$true] %s75_s1 }
   0x5   :  { %s96_s14 = scalar_lea.vmem %s76_s1, 128  ;;  %p101_p1 = scmp.lt.s32.totalorder %s76_s1, %s76_s1 }
   0x6   :  { %p97_p0 = scmp.ne.s32.totalorder %s76_s1, %s96_s14  ;;  %p102_p2 = scmp.lt.s32.totalorder %s96_s14, %s96_s14 }
   0x8   :  { %p103_p3 = por %p102_p2, %p101_p1 }
   0xa   :  { %p104_p4 = pnand %p103_p3, %p97_p0 }
  0x1a   :  { %30 = vperm.xlu0 %89, %v13_v3  }
  0x91   :  { %v17_v4 = vpop.xlane.xlu0 %16 }
  0x92   :  { %v18_v5 = vsub.f32 %v12_v0, %v17_v4 }
  0x94   :  { %v19_v6 = vmul.f32 1.442695, %v18_v5 }
  0x96   :  { %90 = vpow2.f32 %v19_v6 }
  0x99   :  { %v31_v9 = vpop.permute.xlu0 %30 }
  0x9a   :  { %vm32_vm1 = vcmp.eq.s32.totalorder %v28_v8, %v31_v9 }
  0x9b   :  { %v33_v11 = vsel %vm32_vm1, %v12_v0, 0.0 }
  0x9c   :  { %v34_v13 = vsel %vm14_vm0, %v33_v11, 0.0 }
  0xa0   :  { %v91_v10 = vpop.eup %90 }
  0xa1   :  { %v21_v12 = vsel %vm14_vm0, %v91_v10, 0.0 }
  0xa2   :  { %22 = vadd.xlane.f32.xlu1 %v21_v12 }
  0xa6   :  { %35 = vadd.xlane.f32.xlu1 %v34_v13 }
 0x12f   :  { %v23_v14 = vpop.xlane.xlu1 %22 }
 0x130   :  { %92 = vlog2.f32 %v23_v14 }
 0x133   :  { %v36_v17 = vpop.xlane.xlu1 %35 }
 0x13a   :  { %v93_v15 = vpop.eup %92 }
 0x13b   :  { %v25_v16 = vmul.f32 0.6931472, %v93_v15 }
 0x13d   :  { %v26_v18 = vadd.f32 %v25_v16, %v17_v4 }
 0x13f   :  { %v37_v19 = vsub.f32 %v26_v18, %v36_v17 }
 0x141   :  { %v83_v20 = vadd.f32 -0.5, %v37_v19 }
 0x143   :  { %v39_v21 = vmul.f32 %v83_v20, %v83_v20 }
 0x145   :  { %v40_v22 = vadd.f32 1.0, %v39_v21 }
 0x147   :  { %94 = vrsqrt.f32 %v40_v22  ;;  %vm43_vm2 = vcmp.eq.f32.partialorder %v40_v22, inf  ;;  %v46_v25 = vand.u32 2147483648, %v40_v22  ;;  %vm45_vm3 = vcmp.eq.f32.partialorder %v40_v22, 0.0 }
 0x151   :  { %v95_v23 = vpop.eup %94 }
 0x152   :  { %v42_v24 = vmul.f32 %v95_v23, %v40_v22 }
 0x154   :  { %v44_v26 = vsel %vm43_vm2, %v40_v22, %v42_v24 }
 0x155   :  { %v47_v27 = vsel %vm45_vm3, %v46_v25, %v44_v26 }
 0x156   :  { %v84_v28 = vadd.f32 -1.0, %v47_v27 }
 0x158   :  { %v57_v29 = vsel %vm56_vm4, %v84_v28, 0.0 }
 0x159   :  { %58 = vadd.xlane.f32.xlu1 %v57_v29 }
 0x1e6   :  { %v59_v30 = vpop.xlane.xlu1 %58 }
 0x1e7   :  { %v60_v31 = vrot.slane %v59_v30, 4 }
 0x1e9   :  { %v61_v32 = vadd.f32 %v60_v31, %v59_v30 }
 0x1eb   :  { %v62_v33 = vrot.slane %v61_v32, 2 }
 0x1ed   :  { %v63_v34 = vadd.f32 %v62_v33, %v61_v32 }
 0x1ef   :  { %v64_v35 = vrot.slane %v63_v34, 1 }
 0x1f1   :  { %v65_v36 = vadd.f32 %v64_v35, %v63_v34 }
 0x1f3   :  { %85 = vpush %v65_v36 }
 0x224   :  { %s86_s13 = spop %85 }
 0x225   :  { %v67_v37 = vstv %s86_s13 }
 0x226   :  { %68 = vst [vmem:[#allocation2] sm:$0xff] %v67_v37 }
 0x227   :  { %107 = shalt.err (!%p104_p4)
}
 0x228   :  { %s108_s17 = scalar_lea.hbm %s160_s2, 128 }
 0x229   :  { %p109_p5 = scmp.ne.s32.totalorder %s160_s2, %s108_s17  ;;  %p112_p6 = scmp.lt.u32.totalorder %s108_s17, %s160_s2 }
 0x22b   :  { %p114_p7 = pnand %p112_p6, %p109_p5 }
 0x22d   :  { %117 = shalt.err (!%p114_p7)
}
 0x22e   :  { %78 = dma.vmem_to_hbm [thread:$0]  %s76_s1, 128, %s160_s2, [#allocation3]  }
 0x22f   :  { %118 = dma.done.wait [#allocation3], 128  }
 0x230   :  { %119 = vsyncadd [#allocation3], 4294967168 }
 0x231   :  { %82 = vsyncpa [#allocation3], 1 }

</bundles_post_ra>
